<compile_context>
chip_gen: v7x
topology: tpu7x:2x2x1
jax: 0.10.0
libtpu: 0.0.40
codegen_flags: <defaults>
</compile_context>

<pallas_src>
import functools

import jax
import jax.numpy as jnp
from jax import lax
from jax.experimental import pallas as pl
from jax.experimental.pallas import tpu as pltpu


_LANE = 128


def _round_up(x, m):
    return (x + m - 1) // m * m


def _pair(v):
    return (v, v) if isinstance(v, int) else tuple(v)


def _phase_convt_kernel(x_ref, w_ref, b_ref, o_ref, *, tap_offsets, slice_len):
    """One (batch item, phase) output block of the sub-pixel transposed conv.

    x_ref : (Cin, Lf)                 bf16  flattened padded input, one DMA per batch item
    w_ref : (n_ph*n_taps, Cout, Cin)  bf16  all phase/tap weights, resident (Buffered(1))
    b_ref : (Cout, 1)                 f32   bias, resident (Buffered(1))
    o_ref : (Cout, L)                       lane-dense phase output (L % 128 == 0)
    """
    n_taps = len(tap_offsets)
    base = pl.program_id(1) * n_taps          # dynamic leading-axis tap select
    acc = jnp.dot(w_ref[base],
                  x_ref[:, pl.ds(tap_offsets[0], slice_len)],
                  preferred_element_type=jnp.float32)
    for t in range(1, n_taps):
        acc = acc + jnp.dot(w_ref[base + t],
                            x_ref[:, pl.ds(tap_offsets[t], slice_len)],
                            preferred_element_type=jnp.float32)
    o_ref[...] = (acc + b_ref[...]).astype(o_ref.dtype)


def lora_transpose_conv2d(x_nchw, conv_weight, conv_bias, lora_A, lora_B,
                          *, stride=1, padding=0, output_padding=0,
                          lora_scaling=1.0, vmem_limit_mb=48):
    """Forward pass of LoRATransposeConv2d.

    x_nchw      : (N, Cin, H, W)
    conv_weight : (Cin, Cout, kH, kW)   -- PyTorch ConvTranspose2d weight layout
    conv_bias   : (Cout,)
    lora_A      : (rank, Cin*kH*kW)
    lora_B      : (Cout, rank)

    vmem_limit_mb: scoped VMEM budget; 48 MiB is safe on v5e/v6e/v7x (v6e may
    raise to 96 for very large layers, keep <=48 on v7x's 64 MiB VMEM).
    """
    n, c_in, h, w = x_nchw.shape
    wc_in, c_out, k_h, k_w = conv_weight.shape
    assert wc_in == c_in, (wc_in, c_in)
    s_h, s_w = _pair(stride)
    p_h, p_w = _pair(padding)
    op_h, op_w = _pair(output_padding)

    # ---- LoRA weight adjustment (raw row-major reshape == the module's .view()).
    ba = jnp.matmul(lora_B, lora_A)                               # (Cout, Cin*kH*kW)
    adj_w = conv_weight + lora_scaling * ba.reshape(c_in, c_out, k_h, k_w)

    # ---- Sub-pixel decomposition: output phase (ry, rx) is a stride-1 full
    # correlation of x with the (flipped) sub-kernel w[:, :, ry::s, rx::s].
    kp_h = -(-k_h // s_h)
    kp_w = -(-k_w // s_w)
    n_ph = s_h * s_w
    n_taps = kp_h * kp_w

    w_list = []
    for ry in range(s_h):
        for rx in range(s_w):
            for jp in range(kp_h):
                for ip in range(kp_w):
                    kh = ry + s_h * (kp_h - 1 - jp)     # spatially flipped tap
                    kw = rx + s_w * (kp_w - 1 - ip)
                    if kh < k_h and kw < k_w:
                        w_list.append(adj_w[:, :, kh, kw].T)      # (Cout, Cin)
                    else:                                          # padded phase tap
                        w_list.append(jnp.zeros((c_out, c_in), adj_w.dtype))
    w_taps = jnp.stack(w_list, axis=0).astype(jnp.bfloat16)       # (n_ph*n_taps, Cout, Cin)
    bias2d = conv_bias.reshape(c_out, 1).astype(jnp.float32)

    # ---- Flattened, zero-padded input (bf16 BEFORE any glue; ~1x input traffic).
    x_bf = x_nchw.astype(jnp.bfloat16)
    xpad = jnp.pad(x_bf, ((0, 0), (0, 0),
                          (kp_h - 1, kp_h - 1), (kp_w - 1, kp_w - 1)))
    h_x, w_x = h + 2 * (kp_h - 1), w + 2 * (kp_w - 1)
    h_q, w_q = h + kp_h - 1, w + kp_w - 1          # per-phase (valid) output extent
    slice_len = _round_up(h_q * w_x, _LANE)        # lane-dense phase block width
    max_off = (kp_h - 1) * w_x + (kp_w - 1)
    l_f = _round_up(max_off + slice_len, _LANE)    # keep every tap slice in-bounds
    xf = xpad.reshape(n, c_in, h_x * w_x)
    xf = jnp.pad(xf, ((0, 0), (0, 0), (0, l_f - h_x * w_x)))

    # tap (jp, ip) == flat lane offset jp*Wx + ip into the flattened padded input
    tap_offsets = tuple(jp * w_x + ip for jp in range(kp_h) for ip in range(kp_w))

    out_dtype = x_nchw.dtype
    grid = (n, n_ph)
    cost = pl.CostEstimate(
        flops=2 * n * n_ph * n_taps * c_out * c_in * slice_len,
        transcendentals=0,
        bytes_accessed=(xf.size * 2 + w_taps.size * 2 + bias2d.size * 4
                        + n * n_ph * c_out * slice_len
                        * jnp.dtype(out_dtype).itemsize))

    kernel = functools.partial(_phase_convt_kernel,
                               tap_offsets=tap_offsets, slice_len=slice_len)

    out_flat = pl.pallas_call(
        kernel,
        out_shape=jax.ShapeDtypeStruct((n, n_ph, c_out, slice_len), out_dtype),
        grid_spec=pltpu.PrefetchScalarGridSpec(
            num_scalar_prefetch=0,
            grid=grid,
            in_specs=[
                # input: block index constant over phases -> DMA'd once per batch item
                pl.BlockSpec((pl.Squeezed(), c_in, l_f), lambda i, j: (i, 0, 0)),
                # all phase/tap weights: resident, single-buffered
                pl.BlockSpec((n_ph * n_taps, c_out, c_in), lambda i, j: (0, 0, 0),
                             pipeline_mode=pl.Buffered(1)),
                # bias: resident, single-buffered
                pl.BlockSpec((c_out, 1), lambda i, j: (0, 0),
                             pipeline_mode=pl.Buffered(1)),
            ],
            out_specs=pl.BlockSpec(
                (pl.Squeezed(), pl.Squeezed(), c_out, slice_len),
                lambda i, j: (i, j, 0, 0)),
        ),
        compiler_params=pltpu.CompilerParams(
            dimension_semantics=("parallel", "parallel"),
            vmem_limit_bytes=vmem_limit_mb * 1024 * 1024),
        cost_estimate=cost,
    )(xf, w_taps, bias2d)

    # ---- Epilogue (single cheap XLA pass over the output): drop the lane
    # padding + row-wrap garbage columns, interleave the s*s phases, crop padding.
    h_o = (h - 1) * s_h - 2 * p_h + k_h + op_h
    w_o = (w - 1) * s_w - 2 * p_w + k_w + op_w
    valid = out_flat[:, :, :, :h_q * w_x].reshape(
        n, s_h, s_w, c_out, h_q, w_x)[..., :w_q]                  # (N, sh, sw, Co, Hq, Wq)
    full = jnp.transpose(valid, (0, 3, 4, 1, 5, 2)).reshape(
        n, c_out, h_q * s_h, w_q * s_w)
    full_h, full_w = h_q * s_h, w_q * s_w
    pad_h = max(0, p_h + h_o - full_h)
    pad_w = max(0, p_w + w_o - full_w)
    if pad_h or pad_w:
        # Only reachable when output_padding exceeds padding: those rows/cols
        # have no kernel support and equal the bias.
        full = jnp.pad(full, ((0, 0), (0, 0), (0, pad_h), (0, pad_w)))
        out = full[:, :, p_h:p_h + h_o, p_w:p_w + w_o]
        oy = jnp.arange(p_h, p_h + h_o)
        ox = jnp.arange(p_w, p_w + w_o)
        mask = (oy[:, None] >= full_h) | (ox[None, :] >= full_w)
        out = jnp.where(mask[None, None],
                        conv_bias.astype(out.dtype)[None, :, None, None], out)
    else:
        out = full[:, :, p_h:p_h + h_o, p_w:p_w + w_o]
    return out


def _reference(x_nchw, conv_weight, conv_bias, lora_A, lora_B, *,
               stride, padding, output_padding=0, lora_scaling=1.0,
               quantize_bf16=False):
    """Pure-JAX/XLA reference with the same semantics (independent of the kernel)."""
    c_in, c_out, k_h, k_w = conv_weight.shape
    ba = jnp.matmul(lora_B, lora_A)
    adj_w = conv_weight + lora_scaling * ba.reshape(c_in, c_out, k_h, k_w)
    if quantize_bf16:
        # Match the kernel's bf16 operand quantization (f32 accumulation).
        adj_w = adj_w.astype(jnp.bfloat16).astype(jnp.float32)
        x_nchw = x_nchw.astype(jnp.bfloat16).astype(jnp.float32)
    w_oihw = jnp.transpose(adj_w[:, :, ::-1, ::-1], (1, 0, 2, 3))
    out = lax.conv_general_dilated(
        x_nchw, w_oihw, window_strides=(1, 1),
        padding=((k_h - 1 - padding, k_h - 1 - padding + output_padding),
                 (k_w - 1 - padding, k_w - 1 - padding + output_padding)),
        lhs_dilation=(stride, stride),
        dimension_numbers=('NCHW', 'OIHW', 'NCHW'),
        precision=lax.Precision.HIGHEST)
    return out + conv_bias[None, :, None, None]


if __name__ == "__main__":
    # Small shapes consistent with the module: a wav2lip-style upsampling block.
    N, Cin, H, W = 2, 4, 16, 16
    Cout, K, stride, padding = 8, 4, 2, 1
    rank, scaling = 4, 1.0

    key = jax.random.PRNGKey(0)
    k1, k2, k3, k4, k5 = jax.random.split(key, 5)
    x = jax.random.normal(k1, (N, Cin, H, W), jnp.float32)
    conv_w = jax.random.normal(k2, (Cin, Cout, K, K), jnp.float32) * 0.1
    conv_b = jax.random.normal(k3, (Cout,), jnp.float32) * 0.1
    lora_A = jax.random.normal(k4, (rank, Cin * K * K), jnp.float32) * 0.02
    # The module zero-inits lora_B; use small nonzero values so the LoRA
    # adjustment path is actually exercised numerically.
    lora_B = jax.random.normal(k5, (Cout, rank), jnp.float32) * 0.1

    fwd = jax.jit(functools.partial(
        lora_transpose_conv2d, stride=stride, padding=padding,
        lora_scaling=scaling))
    out = jax.block_until_ready(fwd(x, conv_w, conv_b, lora_A, lora_B))

    expected_hw = (H - 1) * stride - 2 * padding + K   # ConvTranspose2d output size
    assert out.shape == (N, Cout, expected_hw, expected_hw), out.shape

    # Tight check: identical bf16-quantized operands, f32 math (isolates the
    # kernel's phase/tap indexing from bf16 input rounding).
    ref_q = _reference(x, conv_w, conv_b, lora_A, lora_B, stride=stride,
                       padding=padding, lora_scaling=scaling, quantize_bf16=True)
    assert jnp.allclose(out, ref_q, atol=1e-3, rtol=1e-3), float(
        jnp.max(jnp.abs(out - ref_q)))

    # Loose check against the full-f32 module semantics (bf16 operand rounding).
    ref = _reference(x, conv_w, conv_b, lora_A, lora_B, stride=stride,
                     padding=padding, lora_scaling=scaling)
    assert jnp.allclose(out, ref, atol=5e-2, rtol=5e-2), float(
        jnp.max(jnp.abs(out - ref)))

    print("KERNEL_OK")
</pallas_src>

<mosaic_0001>
module attributes {stable_mosaic.version = 11 : i64} {
  func.func @_phase_convt_kernel(%arg0: i32, %arg1: i32, %arg2: memref<1x4x512xbf16, #tpu.memory_space<vmem>>, %arg3: memref<16x8x4xbf16, #tpu.memory_space<vmem>>, %arg4: memref<8x1xf32, #tpu.memory_space<vmem>>, %arg5: memref<1x1x8x384xf32, #tpu.memory_space<vmem>>) attributes {dimension_semantics = [#tpu.dimension_semantics<parallel>, #tpu.dimension_semantics<parallel>], iteration_bounds = array<i64: 2, 4>, scalar_prefetch = 0 : i64, scratch_operands = 0 : i64, tpu.core_type = #tpu.core_type<tc>, window_params = [{transform_indices = @transform_0, window_bounds = array<i64: 1, 4, 512>}, {pipeline_mode = #tpu.pipeline_mode<synchronous>, transform_indices = @transform_1, window_bounds = array<i64: 16, 8, 4>}, {pipeline_mode = #tpu.pipeline_mode<synchronous>, transform_indices = @transform_2, window_bounds = array<i64: 8, 1>}, {transform_indices = @transform_3, window_bounds = array<i64: 1, 1, 8, 384>}]} {
    %c4_i32 = arith.constant 4 : i32
    %0 = arith.muli %arg1, %c4_i32 : i32
    %1 = arith.index_cast %0 : i32 to index
    %c0 = arith.constant 0 : index
    %c0_0 = arith.constant 0 : index
    %2 = vector.load %arg3[%1, %c0, %c0_0] : memref<16x8x4xbf16, #tpu.memory_space<vmem>>, vector<1x8x4xbf16>
    %3 = vector.shape_cast %2 : vector<1x8x4xbf16> to vector<8x4xbf16>
    %c0_1 = arith.constant 0 : index
    %c0_2 = arith.constant 0 : index
    %c0_3 = arith.constant 0 : index
    %4 = vector.load %arg2[%c0_1, %c0_2, %c0_3] : memref<1x4x512xbf16, #tpu.memory_space<vmem>>, vector<1x4x384xbf16>
    %5 = vector.shape_cast %4 : vector<1x4x384xbf16> to vector<4x384xbf16>
    %cst = arith.constant dense<0.000000e+00> : vector<8x384xf32>
    %6 = tpu.matmul %3, %5, %cst {dimension_numbers = #tpu.dot_dimension_numbers<[1], [0], [0], [1], [0, 0, 1, 1], [], []>} : vector<8x4xbf16>, vector<4x384xbf16>, vector<8x384xf32> -> vector<8x384xf32>
    %c1_i32 = arith.constant 1 : i32
    %7 = arith.addi %0, %c1_i32 : i32
    %8 = arith.index_cast %7 : i32 to index
    %c0_4 = arith.constant 0 : index
    %c0_5 = arith.constant 0 : index
    %9 = vector.load %arg3[%8, %c0_4, %c0_5] : memref<16x8x4xbf16, #tpu.memory_space<vmem>>, vector<1x8x4xbf16>
    %10 = vector.shape_cast %9 : vector<1x8x4xbf16> to vector<8x4xbf16>
    %c0_6 = arith.constant 0 : index
    %c0_7 = arith.constant 0 : index
    %c1 = arith.constant 1 : index
    %11 = vector.load %arg2[%c0_6, %c0_7, %c1] : memref<1x4x512xbf16, #tpu.memory_space<vmem>>, vector<1x4x384xbf16>
    %12 = vector.shape_cast %11 : vector<1x4x384xbf16> to vector<4x384xbf16>
    %cst_8 = arith.constant dense<0.000000e+00> : vector<8x384xf32>
    %13 = tpu.matmul %10, %12, %cst_8 {dimension_numbers = #tpu.dot_dimension_numbers<[1], [0], [0], [1], [0, 0, 1, 1], [], []>} : vector<8x4xbf16>, vector<4x384xbf16>, vector<8x384xf32> -> vector<8x384xf32>
    %14 = arith.addf %6, %13 : vector<8x384xf32>
    %c2_i32 = arith.constant 2 : i32
    %15 = arith.addi %0, %c2_i32 : i32
    %16 = arith.index_cast %15 : i32 to index
    %c0_9 = arith.constant 0 : index
    %c0_10 = arith.constant 0 : index
    %17 = vector.load %arg3[%16, %c0_9, %c0_10] : memref<16x8x4xbf16, #tpu.memory_space<vmem>>, vector<1x8x4xbf16>
    %18 = vector.shape_cast %17 : vector<1x8x4xbf16> to vector<8x4xbf16>
    %c0_11 = arith.constant 0 : index
    %c0_12 = arith.constant 0 : index
    %c18 = arith.constant 18 : index
    %19 = vector.load %arg2[%c0_11, %c0_12, %c18] : memref<1x4x512xbf16, #tpu.memory_space<vmem>>, vector<1x4x384xbf16>
    %20 = vector.shape_cast %19 : vector<1x4x384xbf16> to vector<4x384xbf16>
    %cst_13 = arith.constant dense<0.000000e+00> : vector<8x384xf32>
    %21 = tpu.matmul %18, %20, %cst_13 {dimension_numbers = #tpu.dot_dimension_numbers<[1], [0], [0], [1], [0, 0, 1, 1], [], []>} : vector<8x4xbf16>, vector<4x384xbf16>, vector<8x384xf32> -> vector<8x384xf32>
    %22 = arith.addf %14, %21 : vector<8x384xf32>
    %c3_i32 = arith.constant 3 : i32
    %23 = arith.addi %0, %c3_i32 : i32
    %24 = arith.index_cast %23 : i32 to index
    %c0_14 = arith.constant 0 : index
    %c0_15 = arith.constant 0 : index
    %25 = vector.load %arg3[%24, %c0_14, %c0_15] : memref<16x8x4xbf16, #tpu.memory_space<vmem>>, vector<1x8x4xbf16>
    %26 = vector.shape_cast %25 : vector<1x8x4xbf16> to vector<8x4xbf16>
    %c0_16 = arith.constant 0 : index
    %c0_17 = arith.constant 0 : index
    %c19 = arith.constant 19 : index
    %27 = vector.load %arg2[%c0_16, %c0_17, %c19] : memref<1x4x512xbf16, #tpu.memory_space<vmem>>, vector<1x4x384xbf16>
    %28 = vector.shape_cast %27 : vector<1x4x384xbf16> to vector<4x384xbf16>
    %cst_18 = arith.constant dense<0.000000e+00> : vector<8x384xf32>
    %29 = tpu.matmul %26, %28, %cst_18 {dimension_numbers = #tpu.dot_dimension_numbers<[1], [0], [0], [1], [0, 0, 1, 1], [], []>} : vector<8x4xbf16>, vector<4x384xbf16>, vector<8x384xf32> -> vector<8x384xf32>
    %30 = arith.addf %22, %29 : vector<8x384xf32>
    %c0_19 = arith.constant 0 : index
    %c0_20 = arith.constant 0 : index
    %31 = vector.load %arg4[%c0_19, %c0_20] : memref<8x1xf32, #tpu.memory_space<vmem>>, vector<8x1xf32>
    %32 = vector.broadcast %31 : vector<8x1xf32> to vector<8x384xf32>
    %33 = arith.addf %30, %32 : vector<8x384xf32>
    %c0_21 = arith.constant 0 : index
    %c0_22 = arith.constant 0 : index
    %c0_23 = arith.constant 0 : index
    %c0_24 = arith.constant 0 : index
    %34 = vector.load %arg5[%c0_21, %c0_22, %c0_23, %c0_24] : memref<1x1x8x384xf32, #tpu.memory_space<vmem>>, vector<1x1x8x384xf32>
    %35 = vector.shape_cast %34 : vector<1x1x8x384xf32> to vector<8x384xf32>
    %36 = vector.shape_cast %33 : vector<8x384xf32> to vector<1x1x8x384xf32>
    tpu.vector_store %arg5[%c0_21, %c0_22, %c0_23, %c0_24], %36 {strides = array<i32>} : memref<1x1x8x384xf32, #tpu.memory_space<vmem>>, vector<1x1x8x384xf32>,
    return
  }
  func.func @transform_0(%arg0: i32, %arg1: i32) -> (i32, i32, i32) {
    %c0_i32 = arith.constant 0 : i32
    %c0_i32_0 = arith.constant 0 : i32
    %c0_i32_1 = arith.constant 0 : i32
    return %arg0, %c0_i32, %c0_i32_0 : i32, i32, i32
  }
  func.func @transform_1(%arg0: i32, %arg1: i32) -> (i32, i32, i32) {
    %c0_i32 = arith.constant 0 : i32
    %c0_i32_0 = arith.constant 0 : i32
    %c0_i32_1 = arith.constant 0 : i32
    %c0_i32_2 = arith.constant 0 : i32
    return %c0_i32, %c0_i32_0, %c0_i32_1 : i32, i32, i32
  }
  func.func @transform_2(%arg0: i32, %arg1: i32) -> (i32, i32) {
    %c0_i32 = arith.constant 0 : i32
    %c0_i32_0 = arith.constant 0 : i32
    %c0_i32_1 = arith.constant 0 : i32
    return %c0_i32, %c0_i32_0 : i32, i32
  }
  func.func @transform_3(%arg0: i32, %arg1: i32) -> (i32, i32, i32, i32) {
    %c0_i32 = arith.constant 0 : i32
    %c0_i32_0 = arith.constant 0 : i32
    %c0_i32_1 = arith.constant 0 : i32
    return %arg0, %arg1, %c0_i32, %c0_i32_0 : i32, i32, i32, i32
  }
}

</mosaic_0001>

<bundles_post_ra>
// kernel: lora_transpose_conv2d.1
= control target key start
LH: loop header
LB: loop body
LE: loop exit
PB: predicated region body
PF: predicated region fallthrough
CT: control target
= control target key end

     0   :  { %s1002_s12 = smov 0   ;;  %s1004_s13 = smov 0   ;;  %s1111_s0 = inlined_call_operand.vmem [shape: bf16[2,4,512], index: 0, kind: input, shape index: {}]   ;;  %s1112_s1 = inlined_call_operand.vmem [shape: bf16[16,8,4], index: 1, kind: input, shape index: {}]   ;;  %s1113_s2 = inlined_call_operand.vmem [shape: f32[8,1], index: 2, kind: input, shape index: {}]   ;;  %s1114_s3 = inlined_call_operand.vmem [shape: f32[2,4,8,384], index: 3, kind: output, shape index: {}]  }
   0x1   :  { %s1006_s14 = smov 0   ;;  %s1008_s15 = smov 0  }
   0x2   :  { %s1010_s16 = smov 0  }
   0x3 LB: > { %s22_s17 = sadd.s32 1, %s965_s14  ;;  %s25_s18 = sadd.s32 1, %s969_s15  ;;  %s973_s16 = sphi %s1010_s16, %s13_s16   ;;  %s969_s15 = sphi %s1008_s15, %s1118_s15   ;;  %s965_s14 = sphi %s1006_s14, %s1117_s14   ;;  %s961_s13 = sphi %s1004_s13, %s1116_s13   ;;  %s957_s12 = sphi %s1002_s12, %s1115_s12  }
   0x4   : > { %p23_p0 = scmp.ge.s32.totalorder %s22_s17, 4  ;;  %p817_p1 = scmp.ge.s32.totalorder %s973_s16, 1 }
   0x5   : > { %p151_p2 = scmp.lt.s32.totalorder %s973_s16, 9 }
   0x6   : > { %s1120_s17 = smov (%p23_p0, %s22_s17), 0  ;;  %s1122_s18 = smov (!%p23_p0, %s25_s18), %s969_s15 }
   0x7   : > { %p152_p3 = pnand %p817_p1, %p151_p2  ;;  %p27_p4 = scmp.ge.s32.totalorder %s1122_s18, 2 }
   0x8   : > { %p179_p5 = scmp.lt.s32.totalorder (!%p152_p3), %s961_s13, 1  ;;  %v209_v0 = vlaneseq (!%p152_p3)  ;;  %v975_v1 = vmov (!%p152_p3), 1983009808   ;;  %v976_v5 = vmov (!%p152_p3), 0.0   ;;  %v977_v6 = vmov (!%p152_p3), 0   ;;  %s979_s23 = smov (!%p152_p3), 127  }
   0x9   : > { %s1124_s18 = smov (%p27_p4, %s1122_s18), 0  ;;  %155 = sbr.rel (%p152_p3) target bundleno = 389 (0x185), region = 32 }
   0xa   : > { %v207_v2 = vunpack.c.l.s4 (!%p152_p3), %v975_v1  ;;  %v210_v3 = vshrl.u32 (!%p152_p3), %v209_v0, 7  ;;  %859 = vmatprep.subr.bf16.mxu1 (!%p152_p3), %v976_v5  ;;  %280 = vmatprep.mubr.bf16.mxu0 (!%p152_p3), %v977_v6  ;;  %vm978_vm0 = vmmov (!%p152_p3), 0   ;;  %s980_s24 = smov (!%p152_p3), 110   ;;  %s981_s25 = smov (!%p152_p3), 109   ;;  %v701_v18 = vld [vmem:[%s1113_s2] sm:$0xff] (!%p152_p3)  ;;  %vm230_vm1 = vcmask (!%p152_p3), 1039360  }
   0xb   : > { %932 = vset.pattern.permute.xlu0 (!%p152_p3), %v977_v6  ;;  %861 = vmatprep.mubr.msk.bf16.mxu1 (!%p152_p3), %vm978_vm0, %v976_v5  ;;  %s847_s28 = sshll.u32 (!%p152_p3), %s957_s12, 4  ;;  %vm238_vm2 = vcmask (!%p152_p3), 1041408   ;;  %vm234_vm3 = vcmask (!%p152_p3), 31744   ;;  %vm470_vm4 = vcmask (!%p152_p3), 900096   ;;  %vm601_vm5 = vcmask (!%p152_p3), 891904   ;;  %p186_p6 = scmp.lt.s32.totalorder (!%p152_p3), %s957_s12, 3 }
   0xc   : > { %v208_v4 = vunpack.c.0.s8 (!%p152_p3), %v207_v2  ;;  %s1052_s4 = scalar_lea.vmem (!%p152_p3), %s1112_s1, %s847_s28 }
   0xd   : > { %v825_v28 = vld [vmem:[%s1052_s4 + $0x4] sm:$0xf] (!%p152_p3)  ;;  %v197_v39 = vld [vmem:[%s1052_s4] sm:$0xf] (!%p152_p3)  ;;  %v834_v49 = vld [vmem:[%s1052_s4 + $0x8] sm:$0xf] (!%p152_p3) }
   0xe   : > { %v211_v7 = vsub.s32 (!%p152_p3), %v208_v4, %v210_v3  ;;  %v840_v52 = vld [vmem:[%s1052_s4 + $0xc] sm:$0xf] (!%p152_p3) }
  0x10   : > { %s1126_s13 = smov (!%p179_p5, %s961_s13), 1  ;;  %s1128_s12 = smov (!%p186_p6, %s957_s12), 3 }
  0x11   : > { %s846_s19 = sshll.u32 %s1126_s13, 3  ;;  %s883_s5 = smul.u32 3, %s1128_s12 }
  0x12   : > { %s183_s22 = scalar_lea.vmem %s1111_s0, %s846_s19  ;;  %s884_s6 = smul.u32 12, %s1126_s13 }
  0x13   : > { %v203_v8 = vld [vmem:[%s183_s22] sm:$0xff] }
  0x14   : > { %v198_v9 = vld [vmem:[%s183_s22] sm:$0x3f]  ;;  %v212_v10 = vrot.slane %v203_v8, %v211_v7  ;;  %v205_v11 = vcombine.high %v203_v8, %v203_v8  ;;  %s190_s7 = sadd.s32 %s884_s6, %s883_s5 }
  0x15   : > { %v337_v12 = vrot.slane %v198_v9, %v211_v7  ;;  %v330_v13 = vcombine.high %v198_v9, %v198_v9  ;;  %s820_s8 = sshll.u32 %s190_s7, 3 }
  0x16   : > { %222 = vrot.lane.b32.xlu0 %v212_v10, %s979_s23  ;;  %v220_v14 = vcombine.high %v212_v10, %v212_v10  ;;  %v219_v15 = vrot.slane %v205_v11, %v211_v7  ;;  %s192_s11 = scalar_lea.vmem %s1114_s3, %s820_s8 }
  0x17   : > { %v344_v16 = vrot.slane %v330_v13, %v211_v7  ;;  %v345_v22 = vcombine.high %v337_v12, %v337_v12  ;;  %v350_v31 = vsel %vm238_vm2, %v337_v12, 0 }
  0x18   : > { %226 = vrot.lane.b32.xlu1 %v219_v15, %s979_s23  ;;  %v221_v17 = vcombine.high %v219_v15, %v219_v15 }
  0x19   : > { %v356_v33 = vsel %vm238_vm2, %v344_v16, 0 }
  0x1a   : > { %224 = vrot.lane.b32.xlu0 %v220_v14, %s979_s23 }
  0x1c   : > { %228 = vrot.lane.b32.xlu1 %v221_v17, %s979_s23 }
  0x1e   : > { %462 = vrot.lane.b32.xlu0 %v212_v10, %s980_s24 }
  0x20   : > { %464 = vrot.lane.b32.xlu1 %v220_v14, %s980_s24 }
  0x22   : > { %466 = vrot.lane.b32.xlu0 %v219_v15, %s980_s24 }
  0x24   : > { %468 = vrot.lane.b32.xlu1 %v221_v17, %s980_s24 }
  0x26   : > { %593 = vrot.lane.b32.xlu0 %v212_v10, %s981_s25 }
  0x28   : > { %595 = vrot.lane.b32.xlu1 %v220_v14, %s981_s25 }
  0x2a   : > { %597 = vrot.lane.b32.xlu0 %v219_v15, %s981_s25 }
  0x2c   : > { %599 = vrot.lane.b32.xlu1 %v221_v17, %s981_s25 }
  0x2e   : > { %704 = vperm.xlu0 %932, %v701_v18  }
  0x88   : > { %v223_v19 = vpop.permute.xlu0 %222 }
  0x8a   : > { %v227_v20 = vpop.permute.xlu1 %226 }
  0x8c   : > { %v225_v21 = vpop.permute.xlu0 %224 }
  0x8d   : > { %v232_v23 = vsel %vm230_vm1, %v225_v21, %v227_v20  ;;  %v231_v24 = vsel %vm230_vm1, %v223_v19, %v225_v21 }
  0x8e   : > { %826 = vmatprep.subr.msk.bf16.mxu0 %vm238_vm2, %v232_v23  ;;  %v229_v25 = vpop.permute.xlu1 %228  ;;  %v240_v26 = vsel %vm238_vm2, %v231_v24, 0 }
  0x8f   : > { %249 = vmatpush1.bf16.msra.mxu0 %v240_v26  ;;  %v233_v27 = vsel %vm230_vm1, %v227_v20, %v229_v25 }
  0x90   : > { %v246_v29 = vsel %vm238_vm2, %v233_v27, 0  ;;  %v463_v30 = vpop.permute.xlu0 %462  ;;  %829 = vmatprep.subr.msk.bf16.mxu0 %vm238_vm2, %v345_v22 }
  0x91   : > { %860 = vmatpush3.bf16.msra.mxu1 %v246_v29 }
  0x92   : > { %827 = vmatmul.mubr.msk.bf16.vlgmr.msra.gmra.mrb[0].mxu0 %vm234_vm3, %v825_v28  ;;  %865 = vmatprep.subr.bf16.mxu1 %v976_v5  ;;  %v465_v32 = vpop.permute.xlu1 %464 }
  0x93   : > { %359 = vmatpush1.bf16.msra.mxu0 %v350_v31  ;;  %390 = vmatprep.mubr.bf16.mxu0 %v977_v6  ;;  %v471_v35 = vsel %vm470_vm4, %v463_v30, %v465_v32 }
  0x94   : > { %862 = vmatmul.mubr.msk.bf16.vlgmr.msra.gmra.mrb[0].mxu1 %vm234_vm3, %v825_v28  ;;  %v467_v34 = vpop.permute.xlu0 %466  ;;  %v478_v40 = vsel %vm238_vm2, %v471_v35, 0 }
  0x95   : > { %866 = vmatpush3.bf16.msra.mxu1 %v356_v33  ;;  %v472_v36 = vsel %vm470_vm4, %v465_v32, %v467_v34  ;;  %867 = vmatprep.mubr.msk.bf16.mxu1 %vm978_vm0, %v976_v5 }
  0x96   : > { %835 = vmatprep.subr.msk.bf16.mxu0 %vm238_vm2, %v472_v36  ;;  %v469_v37 = vpop.permute.xlu1 %468  ;;  %871 = vmatprep.subr.bf16.mxu1 %v976_v5 }
  0x97   : > { %v473_v38 = vsel %vm470_vm4, %v467_v34, %v469_v37 }
  0x98   : > { %v594_v41 = vpop.permute.xlu0 %593  ;;  %v484_v42 = vsel %vm238_vm2, %v473_v38, 0 }
  0x9a   : > { %830 = vmatmul.mubr.msk.bf16.vlgmr.msra.gmra.mrb[4].mxu0 %vm234_vm3, %v197_v39  ;;  %v596_v43 = vpop.permute.xlu1 %595 }
  0x9b   : > { %487 = vmatpush1.bf16.msra.mxu0 %v478_v40  ;;  %518 = vmatprep.mubr.bf16.mxu0 %v977_v6  ;;  %v602_v45 = vsel %vm601_vm5, %v594_v41, %v596_v43 }
  0x9c   : > { %868 = vmatmul.mubr.msk.bf16.vlgmr.msra.gmra.mrb[4].mxu1 %vm234_vm3, %v197_v39  ;;  %v598_v44 = vpop.permute.xlu0 %597  ;;  %v609_v50 = vsel %vm238_vm2, %v602_v45, 0 }
  0x9d   : > { %872 = vmatpush3.bf16.msra.mxu1 %v484_v42  ;;  %v603_v46 = vsel %vm601_vm5, %v596_v43, %v598_v44  ;;  %873 = vmatprep.mubr.msk.bf16.mxu1 %vm978_vm0, %v976_v5 }
  0x9e   : > { %841 = vmatprep.subr.msk.bf16.mxu0 %vm238_vm2, %v603_v46  ;;  %v600_v47 = vpop.permute.xlu1 %599  ;;  %877 = vmatprep.subr.bf16.mxu1 %v976_v5 }
  0x9f   : > { %v604_v48 = vsel %vm601_vm5, %v598_v44, %v600_v47 }
  0xa0   : > { %v615_v51 = vsel %vm238_vm2, %v604_v48, 0 }
  0xa2   : > { %836 = vmatmul.mubr.msk.bf16.vlgmr.msra.gmra.mrb[8].mxu0 %vm234_vm3, %v834_v49 }
  0xa3   : > { %618 = vmatpush1.bf16.msra.mxu0 %v609_v50  ;;  %649 = vmatprep.mubr.bf16.mxu0 %v977_v6 }
  0xa4   : > { %874 = vmatmul.mubr.msk.bf16.vlgmr.msra.gmra.mrb[8].mxu1 %vm234_vm3, %v834_v49 }
  0xa5   : > { %878 = vmatpush3.bf16.msra.mxu1 %v615_v51  ;;  %879 = vmatprep.mubr.msk.bf16.mxu1 %vm978_vm0, %v976_v5 }
  0xaa   : > { %842 = vmatmul.mubr.msk.bf16.vlgmr.msra.gmra.mrb[12].mxu0 %vm234_vm3, %v840_v52 }
  0xac   : > { %880 = vmatmul.mubr.msk.bf16.vlgmr.msra.gmra.mrb[12].mxu1 %vm234_vm3, %v840_v52 }
  0xad   : > { %v705_v20 = vpop.permute.xlu0 %704 }
 0x165   : > { %v282_v53 = vpop.f32.mrb[0].mxu0 }
 0x166   : > { %v284_v54 = vpop.f32.mrb[1].mxu0 }
 0x167   : > { %v286_v55 = vpop.f32.mrb[2].mxu0  ;;  %v323_v56 = vpop.f32.mrb[0].mxu1 }
 0x168   : > { %v287_v57 = vpop.f32.mrb[3].mxu0  ;;  %v863_v58 = vpop.f32.mrb[1].mxu1 }
 0x169   : > { %v326_v59 = vpop.f32.mrb[2].mxu1 }
 0x16a   : > { %v864_v60 = vpop.f32.mrb[3].mxu1 }
 0x16d   : > { %v392_v61 = vpop.f32.mrb[4].mxu0 }
 0x16e   : > { %v393_v62 = vadd.f32 %v392_v61, %v282_v53  ;;  %v394_v63 = vpop.f32.mrb[5].mxu0 }
 0x16f   : > { %v395_v0 = vadd.f32 %v394_v63, %v284_v54  ;;  %v396_v1 = vpop.f32.mrb[6].mxu0  ;;  %v433_v2 = vpop.f32.mrb[4].mxu1 }
 0x170   : > { %v434_v3 = vadd.f32 %v433_v2, %v323_v56  ;;  %v397_v4 = vpop.f32.mrb[7].mxu0  ;;  %v869_v5 = vpop.f32.mrb[5].mxu1 }
 0x171   : > { %v436_v6 = vpop.f32.mrb[6].mxu1 }
 0x172   : > { %v870_v7 = vpop.f32.mrb[7].mxu1 }
 0x175   : > { %v520_v8 = vpop.f32.mrb[8].mxu0 }
 0x176   : > { %v567_v9 = vadd.f32 %v520_v8, %v393_v62  ;;  %v522_v10 = vpop.f32.mrb[9].mxu0 }
 0x177   : > { %v568_v11 = vadd.f32 %v522_v10, %v395_v0  ;;  %v524_v12 = vpop.f32.mrb[10].mxu0  ;;  %v561_v13 = vpop.f32.mrb[8].mxu1 }
 0x178   : > { %v569_v14 = vadd.f32 %v561_v13, %v434_v3  ;;  %v525_v15 = vpop.f32.mrb[11].mxu0  ;;  %v875_v16 = vpop.f32.mrb[9].mxu1 }
 0x179   : > { %v564_v17 = vpop.f32.mrb[10].mxu1 }
 0x17a   : > { %v876_v18 = vpop.f32.mrb[11].mxu1 }
 0x17d   : > { %v651_v19 = vpop.f32.mrb[12].mxu0 }
 0x17e   : > { %v698_v21 = vadd.f32 %v651_v19, %v567_v9  ;;  %v653_v22 = vpop.f32.mrb[13].mxu0 }
 0x17f   : > { %v699_v23 = vadd.f32 %v653_v22, %v568_v11  ;;  %v655_v24 = vpop.f32.mrb[14].mxu0  ;;  %v692_v25 = vpop.f32.mrb[12].mxu1 }
 0x180   : > { %v707_v26 = vadd.f32 %v705_v20, %v698_v21  ;;  %v700_v27 = vadd.f32 %v692_v25, %v569_v14  ;;  %v656_v28 = vpop.f32.mrb[15].mxu0  ;;  %v881_v29 = vpop.f32.mrb[13].mxu1 }
 0x181   : > { %v708_v30 = vadd.f32 %v705_v20, %v699_v23  ;;  %v695_v31 = vpop.f32.mrb[14].mxu1 }
 0x182   : > { %710 = vst [vmem:[%s192_s11] sm:$0xff] %v707_v26  ;;  %v709_v32 = vadd.f32 %v705_v20, %v700_v27  ;;  %v882_v33 = vpop.f32.mrb[15].mxu1 }
 0x183   : > { %711 = vst [vmem:[%s192_s11 + $0x8] sm:$0xff] %v708_v30 }
 0x184   : > { %712 = vst [vmem:[%s192_s11 + $0x10] sm:$0xff] %v709_v32 }
 0x185 PF: > { %s13_s16 = sadd.s32 1, %s973_s16   ;;  %s1115_s12 = smov %s965_s14 }
 0x186   : > { %p10_p7 = scmp.ge.s32.totalorder %s13_s16, 10   ;;  %s1116_s13 = smov %s969_s15 }
 0x187   : > { %s1117_s14 = smov %s1120_s17  ;;  %s1118_s15 = smov %s1124_s18 }
 0x188   :  { %12 = sbr.rel (!%p10_p7) target bundleno = 3 (0x3), region = 66 }

</bundles_post_ra>
